<compile_context>
chip_gen: v7x
topology: tpu7x:2x2x1
jax: 0.10.0
libtpu: 0.0.40
codegen_flags: <defaults>
</compile_context>

<pallas_src>
import jax
import jax.numpy as jnp
from jax.experimental import pallas as pl
from jax.experimental.pallas import tpu as pltpu


def _attention_kernel(enc_ref, we_ref, dec_ref, wd_ref, b_ref, out_ref):
    # enc_ref : (S, TB, E2) f32   encoder outputs, original src-major layout
    # we_ref  : (E2, A)     bf16  encoder slice of the attn weight (transposed)
    # dec_ref : (TB, D)     f32   decoder hidden block
    # wd_ref  : (D, A)      f32   decoder slice of the attn weight (transposed)
    # b_ref   : (1, A)      f32   bias
    # out_ref : (TB, S)     f32   softmax attention weights (batch-major)
    S, TB, E2 = enc_ref.shape
    A = we_ref.shape[1]

    # Collapse (S, TB) -> rows for one big MXU dot.  TB is a multiple of 16, so
    # the reshape is layout-preserving.  Cast to bf16 HERE (not in the wrapper)
    # so HBM only ever sees the f32 original once.
    enc2d = enc_ref[...].reshape(S * TB, E2).astype(jnp.bfloat16)
    enc_part = jnp.dot(enc2d, we_ref[...],
                       preferred_element_type=jnp.float32)               # (S*TB, A)

    # Tiny per-block decoder GEMM + bias, fused in-kernel (kept in f32).
    dec_part = jnp.dot(dec_ref[...], wd_ref[...],
                       preferred_element_type=jnp.float32) + b_ref[...]  # (TB, A)

    energy = jnp.tanh(enc_part.reshape(S, TB, A) + dec_part[None, :, :])  # (S, TB, A)
    att = jnp.sum(energy, axis=-1).T                                      # (TB, S)

    # Numerically-stable softmax over src_len (lane axis), all f32.  Exact
    # reciprocal: the kernel is not VALU/EUP bound, and rows then sum to 1.
    m = jnp.max(att, axis=-1, keepdims=True)                              # (TB, 1)
    e = jnp.exp(att - m)                                                  # (TB, S)
    denom = jnp.sum(e, axis=-1, keepdims=True)                            # (TB, 1)
    out_ref[...] = e * pl.reciprocal(denom, approx=False)


def _round_up(x, m):
    return ((x + m - 1) // m) * m


def _step_vmem_bytes(S, tb, E2, A, D):
    """Per-grid-step VMEM footprint with the lane dim padded to 128."""
    lp = lambda n: _round_up(n, 128)
    enc_in  = 2 * S * tb * lp(E2) * 4      # f32 encoder block, double-buffered
    enc_bf  = S * tb * lp(E2) * 2          # in-kernel bf16 copy feeding the MXU
    acc     = 2 * S * tb * lp(A) * 4       # f32 dot result + energy temporaries
    out_b   = 2 * tb * lp(S) * 4           # (tb, S) f32 output block, double-buffered
    dec_in  = 2 * tb * lp(D) * 4           # decoder-hidden block, double-buffered
    weights = lp(E2) * lp(A) * 2 + lp(D) * lp(A) * 4 + 8 * lp(A) * 4
    return enc_in + enc_bf + acc + out_b + dec_in + weights


def _tpu_arch():
    """Best-effort TPU generation sniff (VMEM capacity + TensorCores/chip)."""
    try:
        vmem_physical = int(pltpu.get_tpu_info().vmem_capacity_bytes)
    except Exception:
        vmem_physical = None
    try:
        kind = jax.devices()[0].device_kind.lower()
    except Exception:
        kind = ""
    if vmem_physical is None:
        if "v5" in kind or "v6" in kind:
            vmem_physical = 128 << 20
        else:
            vmem_physical = 64 << 20          # conservative (v7x per-TC VMEM)
    num_tc = 2 if ("7" in kind and "v5" not in kind and "v6" not in kind) else 1
    return vmem_physical, num_tc


def _resident_spec(block_shape, index_map):
    """Constant-index (resident) block: single-buffer it when supported."""
    try:
        return pl.BlockSpec(block_shape, index_map, pipeline_mode=pl.Buffered(1))
    except Exception:
        return pl.BlockSpec(block_shape, index_map)


def make_attention(enc_hid_dim, dec_hid_dim, W, b, *, block_b=None):
    """Build a jitted forward(decoder_hidden, encoder_outputs) -> (B, S).

    W: (attn_dim, dec_hid_dim + 2*enc_hid_dim), b: (attn_dim,)  (nn.Linear params,
    applied to cat([decoder_hidden, encoder_outputs])).  The weight split /
    transpose / bf16 cast is done ONCE here, hoisted out of the per-call path.
    """
    E2 = 2 * enc_hid_dim
    D = dec_hid_dim
    A = W.shape[0]
    assert W.shape == (A, D + E2)

    # cat @ W.T = dec @ W[:, :D].T + enc @ W[:, D:].T
    W_dec_T = jnp.asarray(W[:, :D].T, jnp.float32)      # (D, A)  small, stays f32
    W_enc_T = jnp.asarray(W[:, D:].T, jnp.bfloat16)     # (E2, A) MXU side in bf16
    bias = jnp.asarray(b, jnp.float32).reshape(1, A)    # (1, A)

    vmem_physical, num_tc = _tpu_arch()
    vmem_limit = max(min(vmem_physical, 128 << 20) - (16 << 20), 32 << 20)
    vmem_budget = int(vmem_limit * 0.6)     # headroom for compiler temporaries

    def forward(decoder_hidden, encoder_outputs):
        S, B, E2_in = encoder_outputs.shape
        assert E2_in == E2 and decoder_hidden.shape == (B, D)

        # ---- batch-block selection -----------------------------------------
        if block_b is not None:
            tb = block_b
        else:
            # Single grid step (whole padded batch) is best on single-TC
            # v5e/v6e; shrink only if the per-step footprint busts VMEM.
            tb = _round_up(B, 16)
            while tb > 16 and _step_vmem_bytes(S, tb, E2, A, D) > vmem_budget:
                tb = _round_up(tb // 2, 16)
            # v7x megacore: split across the two TensorCores only when the
            # per-step work clearly beats the ~0.35 us step overhead; aim for
            # >= 4 steps so each core still pipelines its DMAs.
            if num_tc > 1:
                quarter = _round_up(max(_round_up(B, 16) // 4, 16), 16)
                if _step_vmem_bytes(S, quarter, E2, A, D) >= (1 << 20):
                    tb = min(tb, quarter)

        # Pad the batch so tb (a multiple of 16) divides it: keeps the in-kernel
        # (S, TB, E2) -> (S*TB, E2) collapse layout-preserving.  Padded rows are
        # harmless (uniform softmax) and sliced off below.
        B_pad = _round_up(B, tb)
        dec = decoder_hidden.astype(jnp.float32)
        enc = encoder_outputs.astype(jnp.float32)      # NO bf16 cast in the wrapper
        if B_pad != B:
            dec = jnp.pad(dec, ((0, B_pad - B), (0, 0)))
            enc = jnp.pad(enc, ((0, 0), (0, B_pad - B), (0, 0)))
        grid_b = B_pad // tb

        out = pl.pallas_call(
            _attention_kernel,
            out_shape=jax.ShapeDtypeStruct((B_pad, S), jnp.float32),
            grid=(grid_b,),
            in_specs=[
                pl.BlockSpec((S, tb, E2), lambda i: (0, i, 0)),   # encoder slab (src-major, f32)
                _resident_spec((E2, A), lambda i: (0, 0)),        # enc weight (bf16, resident)
                pl.BlockSpec((tb, D), lambda i: (i, 0)),          # decoder hidden block
                _resident_spec((D, A), lambda i: (0, 0)),         # dec weight (resident)
                _resident_spec((1, A), lambda i: (0, 0)),         # bias (resident)
            ],
            out_specs=pl.BlockSpec((tb, S), lambda i: (i, 0)),    # batch-major output
            compiler_params=pltpu.CompilerParams(
                dimension_semantics=("parallel",),
                vmem_limit_bytes=vmem_limit),
        )(enc, W_enc_T, dec, W_dec_T, bias)

        return out[:B] if B_pad != B else out                     # (B, S)

    return jax.jit(forward)


def attention_reference(decoder_hidden, encoder_outputs, W, b):
    """Pure-JAX f32 reference mirroring the PyTorch forward."""
    S = encoder_outputs.shape[0]
    rep = jnp.repeat(decoder_hidden[:, None, :], S, axis=1)       # (B, S, D)
    enc = jnp.transpose(encoder_outputs, (1, 0, 2))               # (B, S, E2)
    cat = jnp.concatenate((rep, enc), axis=2)                     # (B, S, attn_in)
    energy = jnp.tanh(
        jnp.einsum('bsi,ai->bsa', cat, W,
                   precision=jax.lax.Precision.HIGHEST) + b)      # (B, S, A)
    att = jnp.sum(energy, axis=2)                                 # (B, S)
    return jax.nn.softmax(att, axis=1)


if __name__ == "__main__":
    # Small shapes consistent with the module's forward.
    B = 32           # batch
    S = 8            # src_len
    ENC_HID = 16     # enc_hid_dim  -> encoder feature = 2 * 16 = 32
    DEC_HID = 32     # dec_hid_dim
    ATTN = 16        # attn_dim
    ATTN_IN = ENC_HID * 2 + DEC_HID

    key = jax.random.PRNGKey(0)
    k_dec, k_enc, k_w, k_b = jax.random.split(key, 4)

    decoder_hidden = jax.random.normal(k_dec, (B, DEC_HID), dtype=jnp.float32)
    encoder_outputs = jax.random.normal(k_enc, (S, B, 2 * ENC_HID),
                                        dtype=jnp.float32)

    # Deterministic nn.Linear-style init: U(-1/sqrt(fan_in), 1/sqrt(fan_in)).
    bound = 1.0 / (ATTN_IN ** 0.5)
    W = jax.random.uniform(k_w, (ATTN, ATTN_IN), minval=-bound, maxval=bound,
                           dtype=jnp.float32)
    bias = jax.random.uniform(k_b, (ATTN,), minval=-bound, maxval=bound,
                              dtype=jnp.float32)

    attention = make_attention(ENC_HID, DEC_HID, W, bias)
    out = jax.block_until_ready(attention(decoder_hidden, encoder_outputs))

    ref = attention_reference(decoder_hidden, encoder_outputs, W, bias)
    assert out.shape == (B, S)
    # bf16 MXU inputs on the encoder path -> loosened tolerance vs f32 reference.
    assert jnp.allclose(out, ref, atol=2e-2, rtol=2e-2), "mismatch vs reference"
    # Exact softmax divide -> rows sum to 1 tightly.
    assert jnp.allclose(jnp.sum(out, axis=1), jnp.ones((B,)), atol=1e-3)

    print("KERNEL_OK")
</pallas_src>

<mosaic_0001>
module attributes {stable_mosaic.version = 11 : i64} {
  func.func @_attention_kernel(%arg0: i32, %arg1: memref<8x32x32xf32, #tpu.memory_space<vmem>>, %arg2: memref<32x16xbf16, #tpu.memory_space<vmem>>, %arg3: memref<32x32xf32, #tpu.memory_space<vmem>>, %arg4: memref<32x16xf32, #tpu.memory_space<vmem>>, %arg5: memref<1x16xf32, #tpu.memory_space<vmem>>, %arg6: memref<32x8xf32, #tpu.memory_space<vmem>>) attributes {dimension_semantics = [#tpu.dimension_semantics<parallel>], iteration_bounds = array<i64: 1>, scalar_prefetch = 0 : i64, scratch_operands = 0 : i64, tpu.core_type = #tpu.core_type<tc>, window_params = [{transform_indices = @transform_0, window_bounds = array<i64: 8, 32, 32>}, {pipeline_mode = #tpu.pipeline_mode<synchronous>, transform_indices = @transform_1, window_bounds = array<i64: 32, 16>}, {transform_indices = @transform_2, window_bounds = array<i64: 32, 32>}, {pipeline_mode = #tpu.pipeline_mode<synchronous>, transform_indices = @transform_3, window_bounds = array<i64: 32, 16>}, {pipeline_mode = #tpu.pipeline_mode<synchronous>, transform_indices = @transform_4, window_bounds = array<i64: 1, 16>}, {transform_indices = @transform_5, window_bounds = array<i64: 32, 8>}]} {
    %c0 = arith.constant 0 : index
    %c0_0 = arith.constant 0 : index
    %c0_1 = arith.constant 0 : index
    %0 = vector.load %arg1[%c0, %c0_0, %c0_1] : memref<8x32x32xf32, #tpu.memory_space<vmem>>, vector<8x32x32xf32>
    %1 = vector.shape_cast %0 : vector<8x32x32xf32> to vector<256x32xf32>
    %2 = arith.truncf %1 : vector<256x32xf32> to vector<256x32xbf16>
    %c0_2 = arith.constant 0 : index
    %c0_3 = arith.constant 0 : index
    %3 = vector.load %arg2[%c0_2, %c0_3] : memref<32x16xbf16, #tpu.memory_space<vmem>>, vector<32x16xbf16>
    %cst = arith.constant dense<0.000000e+00> : vector<256x16xf32>
    %4 = tpu.matmul %2, %3, %cst {dimension_numbers = #tpu.dot_dimension_numbers<[1], [0], [0], [1], [0, 0, 1, 1], [], []>} : vector<256x32xbf16>, vector<32x16xbf16>, vector<256x16xf32> -> vector<256x16xf32>
    %c0_4 = arith.constant 0 : index
    %c0_5 = arith.constant 0 : index
    %5 = vector.load %arg3[%c0_4, %c0_5] : memref<32x32xf32, #tpu.memory_space<vmem>>, vector<32x32xf32>
    %c0_6 = arith.constant 0 : index
    %c0_7 = arith.constant 0 : index
    %6 = vector.load %arg4[%c0_6, %c0_7] : memref<32x16xf32, #tpu.memory_space<vmem>>, vector<32x16xf32>
    %cst_8 = arith.constant dense<0.000000e+00> : vector<32x16xf32>
    %7 = tpu.matmul %5, %6, %cst_8 {dimension_numbers = #tpu.dot_dimension_numbers<[1], [0], [0], [1], [0, 0, 1, 1], [], []>} : vector<32x32xf32>, vector<32x16xf32>, vector<32x16xf32> -> vector<32x16xf32>
    %c0_9 = arith.constant 0 : index
    %c0_10 = arith.constant 0 : index
    %8 = vector.load %arg5[%c0_9, %c0_10] : memref<1x16xf32, #tpu.memory_space<vmem>>, vector<1x16xf32>
    %9 = vector.broadcast %8 : vector<1x16xf32> to vector<32x16xf32>
    %10 = arith.addf %7, %9 : vector<32x16xf32>
    %11 = vector.shape_cast %4 : vector<256x16xf32> to vector<8x32x16xf32>
    %12 = vector.shape_cast %10 : vector<32x16xf32> to vector<1x32x16xf32>
    %13 = vector.broadcast %12 : vector<1x32x16xf32> to vector<8x32x16xf32>
    %14 = arith.addf %11, %13 : vector<8x32x16xf32>
    %15 = math.tanh %14 : vector<8x32x16xf32>
    %cst_11 = arith.constant dense<0.000000e+00> : vector<8x32xf32>
    %16 = vector.multi_reduction <add>, %15, %cst_11 [2] : vector<8x32x16xf32> to vector<8x32xf32>
    %17 = tpu.transpose %16, [1, 0] : vector<8x32xf32> -> vector<32x8xf32>
    %cst_12 = arith.constant dense<0xFF800000> : vector<32xf32>
    %18 = vector.multi_reduction <maximumf>, %17, %cst_12 [1] : vector<32x8xf32> to vector<32xf32>
    %19 = vector.shape_cast %18 : vector<32xf32> to vector<32x1xf32>
    %20 = vector.broadcast %19 : vector<32x1xf32> to vector<32x8xf32>
    %21 = arith.subf %17, %20 : vector<32x8xf32>
    %22 = math.exp %21 : vector<32x8xf32>
    %cst_13 = arith.constant dense<0.000000e+00> : vector<32xf32>
    %23 = vector.multi_reduction <add>, %22, %cst_13 [1] : vector<32x8xf32> to vector<32xf32>
    %24 = vector.shape_cast %23 : vector<32xf32> to vector<32x1xf32>
    %25 = tpu.reciprocal %24 : vector<32x1xf32> -> vector<32x1xf32>
    %26 = vector.broadcast %25 : vector<32x1xf32> to vector<32x8xf32>
    %27 = arith.mulf %22, %26 : vector<32x8xf32>
    %c0_14 = arith.constant 0 : index
    %c0_15 = arith.constant 0 : index
    %28 = vector.load %arg6[%c0_14, %c0_15] : memref<32x8xf32, #tpu.memory_space<vmem>>, vector<32x8xf32>
    tpu.vector_store %arg6[%c0_14, %c0_15], %27 {strides = array<i32>} : memref<32x8xf32, #tpu.memory_space<vmem>>, vector<32x8xf32>,
    return
  }
  func.func @transform_0(%arg0: i32) -> (i32, i32, i32) {
    %c0_i32 = arith.constant 0 : i32
    %c0_i32_0 = arith.constant 0 : i32
    %c0_i32_1 = arith.constant 0 : i32
    return %c0_i32, %arg0, %c0_i32_0 : i32, i32, i32
  }
  func.func @transform_1(%arg0: i32) -> (i32, i32) {
    %c0_i32 = arith.constant 0 : i32
    %c0_i32_0 = arith.constant 0 : i32
    %c0_i32_1 = arith.constant 0 : i32
    return %c0_i32, %c0_i32_0 : i32, i32
  }
  func.func @transform_2(%arg0: i32) -> (i32, i32) {
    %c0_i32 = arith.constant 0 : i32
    %c0_i32_0 = arith.constant 0 : i32
    return %arg0, %c0_i32 : i32, i32
  }
  func.func @transform_3(%arg0: i32) -> (i32, i32) {
    %c0_i32 = arith.constant 0 : i32
    %c0_i32_0 = arith.constant 0 : i32
    %c0_i32_1 = arith.constant 0 : i32
    return %c0_i32, %c0_i32_0 : i32, i32
  }
  func.func @transform_4(%arg0: i32) -> (i32, i32) {
    %c0_i32 = arith.constant 0 : i32
    %c0_i32_0 = arith.constant 0 : i32
    %c0_i32_1 = arith.constant 0 : i32
    return %c0_i32, %c0_i32_0 : i32, i32
  }
  func.func @transform_5(%arg0: i32) -> (i32, i32) {
    %c0_i32 = arith.constant 0 : i32
    %c0_i32_0 = arith.constant 0 : i32
    return %arg0, %c0_i32 : i32, i32
  }
}

</mosaic_0001>

<bundles_post_ra>
// kernel: forward.1
= control target key start
LH: loop header
LB: loop body
LE: loop exit
PB: predicated region body
PF: predicated region fallthrough
CT: control target
= control target key end

     0   :  { %10 = vsyncpa [#allocation3], 0  ;;  %s1513_s0 = inlined_call_operand.hbm [shape: f32[8,32,32], index: 0, kind: input, shape index: {}]   ;;  %s1514_s1 = inlined_call_operand.vmem [shape: bf16[32,16], index: 1, kind: input, shape index: {}]   ;;  %s1515_s2 = inlined_call_operand.hbm [shape: f32[32,32], index: 2, kind: input, shape index: {}]   ;;  %s1516_s3 = inlined_call_operand.hbm [shape: f32[32,16], index: 3, kind: input, shape index: {}]   ;;  %s1517_s4 = inlined_call_operand.vmem [shape: f32[1,16], index: 4, kind: input, shape index: {}]   ;;  %s1518_s5 = inlined_call_operand.vmem [shape: f32[32,8], index: 5, kind: output, shape index: {}]  }
   0x1   :  { %11 = vsyncpa [#allocation5], 0  ;;  %s1172_s18 = smov [#allocation4]   ;;  %s1173_s20 = smov [#allocation2]  }
   0x2   :  { %s31_s19 = sshll.u32 %s1172_s18, 4  ;;  %s17_s21 = sshll.u32 %s1173_s20, 4  ;;  %s32_s19 = int_to_ptr.vmem [resolvable:$true] %s31_s19  ;;  %s1207_s21 = int_to_ptr.vmem [resolvable:$true] %s17_s21 }
   0x3   :  { %s1102_s24 = scalar_lea.hbm %s1515_s2, 512 }
   0x4   :  { %p1103_p0 = scmp.ne.s32.totalorder %s1515_s2, %s1102_s24  ;;  %p1106_p1 = scmp.lt.u32.totalorder %s1102_s24, %s1515_s2 }
   0x6   :  { %p1108_p2 = pnand %p1106_p1, %p1103_p0 }
   0x8   :  { %1111 = shalt.err (!%p1108_p2)
}
   0x9   :  { %s1112_s29 = scalar_lea.vmem %s32_s19, 512  ;;  %p1117_p4 = scmp.lt.s32.totalorder %s32_s19, %s32_s19 }
   0xa   :  { %p1113_p3 = scmp.ne.s32.totalorder %s32_s19, %s1112_s29  ;;  %p1118_p5 = scmp.lt.s32.totalorder %s1112_s29, %s1112_s29 }
   0xc   :  { %p1119_p6 = por %p1118_p5, %p1117_p4 }
   0xe   :  { %p1120_p7 = pnand %p1119_p6, %p1113_p3 }
  0x10   :  { %1123 = shalt.err (!%p1120_p7)
}
  0x11   :  { %s1174_s30 = smov 128   ;;  %s1175_s6 = smov 8  }
  0x12   :  { %37 = dma.hbm_to_vmem [thread:$0]  %s1515_s2, 512, %s32_s19, [#allocation5], %s1174_s30, %s1174_s30, %s1175_s6  }
  0x13   :  { %s1124_s11 = scalar_lea.hbm %s1513_s0, 4096 }
  0x14   :  { %p1125_p8 = scmp.ne.s32.totalorder %s1513_s0, %s1124_s11  ;;  %p1128_p9 = scmp.lt.u32.totalorder %s1124_s11, %s1513_s0 }
  0x16   :  { %p1130_p10 = pnand %p1128_p9, %p1125_p8 }
  0x18   :  { %1133 = shalt.err (!%p1130_p10)
}
  0x19   :  { %s1134_s16 = scalar_lea.vmem %s1207_s21, 4096  ;;  %p1139_p12 = scmp.lt.s32.totalorder %s1207_s21, %s1207_s21 }
  0x1a   :  { %p1135_p11 = scmp.ne.s32.totalorder %s1207_s21, %s1134_s16  ;;  %p1140_p13 = scmp.lt.s32.totalorder %s1134_s16, %s1134_s16 }
  0x1c   :  { %p1141_p0 = por %p1140_p13, %p1139_p12 }
  0x1e   :  { %p1142_p1 = pnand %p1141_p0, %p1135_p11 }
  0x20   :  { %1145 = shalt.err (!%p1142_p1)
}
  0x21   :  { %23 = dma.hbm_to_vmem [thread:$0]  %s1513_s0, 4096, %s1207_s21, [#allocation3], %s1174_s30, %s1174_s30, %s1175_s6  }
  0x22   :  { %s1176_s18 = smov [#allocation6]   ;;  %s1146_s23 = scalar_lea.hbm %s1516_s3, 512 }
  0x23   :  { %s43_s19 = sshll.u32 %s1176_s18, 4  ;;  %p1147_p2 = scmp.ne.s32.totalorder %s1516_s3, %s1146_s23  ;;  %s44_s19 = int_to_ptr.vmem [resolvable:$true] %s43_s19 }
  0x24   :  { %p1150_p3 = scmp.lt.u32.totalorder %s1146_s23, %s1516_s3 }
  0x26   :  { %p1152_p4 = pnand %p1150_p3, %p1147_p2 }
  0x28   :  { %1155 = shalt.err (!%p1152_p4)
}
  0x29   :  { %s1156_s28 = scalar_lea.vmem %s44_s19, 512  ;;  %p1161_p6 = scmp.lt.s32.totalorder %s44_s19, %s44_s19 }
  0x2a   :  { %p1157_p5 = scmp.ne.s32.totalorder %s44_s19, %s1156_s28  ;;  %p1162_p7 = scmp.lt.s32.totalorder %s1156_s28, %s1156_s28 }
  0x2c   :  { %p1163_p8 = por %p1162_p7, %p1161_p6 }
  0x2e   :  { %p1164_p9 = pnand %p1163_p8, %p1157_p5 }
  0x30   :  { %1167 = shalt.err (!%p1164_p9)
}
  0x31   :  { %49 = dma.hbm_to_vmem [thread:$0]  %s1516_s3, 512, %s44_s19, [#allocation5], %s1174_s30, %s1174_s30, %s1175_s6  }
  0x32   :  { %1168 = dma.done.wait [#allocation3], 4096  }
  0x33   :  { %1169 = vsyncadd [#allocation3], 4294963200 }
  0x34   :  { %1170 = dma.done.wait [#allocation5], 1024  }
  0x35   :  { %1171 = vsyncadd [#allocation5], 4294966272  ;;  %v1020_v0 = vld [vmem:[%s1514_s1] sm:$0xff]   ;;  %v1021_v1 = vld [vmem:[%s1514_s1 + $0x8] sm:$0xff]   ;;  %vm126_vm0 = vcmask 261120   ;;  %vm512_vm1 = vcmask 130048  }
  0x36   :  { %952 = vmatprep.subr.bf16.mxu0 %v1020_v0  ;;  %1010 = vmatprep.subr.bf16.mxu1 %v1020_v0  ;;  %v62_v2 = vld [vmem:[#allocation2] sm:$0xff]  ;;  %v63_v3 = vld [vmem:[#allocation2 + $0x8] sm:$0xff]  ;;  %v64_v7 = vld [vmem:[#allocation2 + $0x10] sm:$0xff]  ;;  %vm652_vm2 = vcmask 130112   ;;  %vm659_vm3 = vcmask 195712   ;;  %vm666_vm4 = vcmask 261312  }
  0x37   :  { %v82_v4 = vld [vmem:[#allocation2 + $0xa0] sm:$0xff]  ;;  %953 = vmatpush3.bf16.msra.mxu0 %v1020_v0  ;;  %1012 = vmatpush3.bf16.msra.mxu1 %v1020_v0  ;;  %v94_v5 = vpack.c.bf16 %v63_v3, %v62_v2  ;;  %v83_v6 = vld [vmem:[#allocation2 + $0xa8] sm:$0xff]  ;;  %v65_v8 = vld [vmem:[#allocation2 + $0x18] sm:$0xff]  ;;  %vm801_vm5 = vcmask 1041409   ;;  %vm803_vm6 = vcmask 1042434   ;;  %vm805_vm7 = vcmask 1043459  }
  0x38   :  { %954 = vmatprep.subr.bf16.mxu0 %v1021_v1  ;;  %1011 = vmatprep.subr.bf16.mxu1 %v1021_v1  ;;  %v104_v9 = vpack.c.bf16 %v83_v6, %v82_v4  ;;  %v84_v10 = vld [vmem:[#allocation2 + $0xb0] sm:$0xff]  ;;  %v85_v11 = vld [vmem:[#allocation2 + $0xb8] sm:$0xff]  ;;  %v340_v12 = vld [vmem:[#allocation6] sm:$0xff]  ;;  %v95_v16 = vpack.c.bf16 %v65_v8, %v64_v7  ;;  %vm807_vm8 = vcmask 1044484   ;;  %vm809_vm9 = vcmask 1045509  }
  0x39   :  { %956 = vmatprep.mubr.msk.bf16.mxu0 %vm126_vm0, %v94_v5  ;;  %v341_v13 = vld [vmem:[#allocation6 + $0x8] sm:$0xff]  ;;  %v66_v14 = vld [vmem:[#allocation2 + $0x20] sm:$0xff]  ;;  %v105_v17 = vpack.c.bf16 %v85_v11, %v84_v10  ;;  %v342_v23 = vld [vmem:[#allocation6 + $0x10] sm:$0xff]  ;;  %vm811_vm10 = vcmask 1046534   ;;  %vm813_vm11 = vcmask 1047559   ;;  %vm848_vm12 = vcmask 64512  }
  0x3a   :  { %v67_v15 = vld [vmem:[#allocation2 + $0x28] sm:$0xff]  ;;  %976 = vmatprep.mubr.msk.bf16.mxu1 %vm126_vm0, %v104_v9  ;;  %v1002_v18 = vpack.c.bf16 %v341_v13, %v340_v12  ;;  %v86_v19 = vld [vmem:[#allocation2 + $0xc0] sm:$0xff]  ;;  %v343_v24 = vld [vmem:[#allocation6 + $0x18] sm:$0xff] }
  0x3b   :  { %v87_v20 = vld [vmem:[#allocation2 + $0xc8] sm:$0xff]  ;;  %955 = vmatpush3.bf16.msra.mxu0 %v1021_v1  ;;  %1013 = vmatpush3.bf16.msra.mxu1 %v1021_v1  ;;  %v96_v21 = vpack.c.bf16 %v67_v15, %v66_v14  ;;  %v1006_v25 = vpack.c.bf16 %v343_v24, %v342_v23  ;;  %v68_v26 = vld [vmem:[#allocation2 + $0x30] sm:$0xff]  ;;  %v69_v27 = vld [vmem:[#allocation2 + $0x38] sm:$0xff] }
  0x3c   :  { %1003 = vmatprep.subr.bf16.mxu1 %v1002_v18  ;;  %v106_v22 = vpack.c.bf16 %v87_v20, %v86_v19  ;;  %v88_v28 = vld [vmem:[#allocation2 + $0xd0] sm:$0xff]  ;;  %v89_v29 = vld [vmem:[#allocation2 + $0xd8] sm:$0xff]  ;;  %v70_v30 = vld [vmem:[#allocation2 + $0x40] sm:$0xff]  ;;  %v97_v34 = vpack.c.bf16 %v69_v27, %v68_v26 }
  0x3d   :  { %v71_v31 = vld [vmem:[#allocation2 + $0x48] sm:$0xff]  ;;  %v90_v32 = vld [vmem:[#allocation2 + $0xe0] sm:$0xff]  ;;  %v107_v35 = vpack.c.bf16 %v89_v29, %v88_v28  ;;  %v72_v38 = vld [vmem:[#allocation2 + $0x50] sm:$0xff] }
  0x3e   :  { %957 = vmatmul.mubr.msk.bf16.vlgmr.msra.gmra.mrb[0].mxu0 %vm126_vm0, %v95_v16  ;;  %977 = vmatmul.mubr.msk.bf16.vlgmr.msra.gmra.mrb[0].mxu1 %vm126_vm0, %v105_v17  ;;  %v91_v33 = vld [vmem:[#allocation2 + $0xe8] sm:$0xff]  ;;  %v98_v36 = vpack.c.bf16 %v71_v31, %v70_v30  ;;  %v73_v39 = vld [vmem:[#allocation2 + $0x58] sm:$0xff]  ;;  %v92_v40 = vld [vmem:[#allocation2 + $0xf0] sm:$0xff] }
  0x3f   :  { %1005 = vmatpush3.bf16.msra.mxu1 %v1002_v18  ;;  %960 = vmatprep.mubr.msk.bf16.mxu0 %vm126_vm0, %v96_v21  ;;  %v108_v37 = vpack.c.bf16 %v91_v33, %v90_v32  ;;  %v93_v41 = vld [vmem:[#allocation2 + $0xf8] sm:$0xff]  ;;  %v74_v42 = vld [vmem:[#allocation2 + $0x60] sm:$0xff]  ;;  %v75_v43 = vld [vmem:[#allocation2 + $0x68] sm:$0xff]  ;;  %v99_v44 = vpack.c.bf16 %v73_v39, %v72_v38 }
  0x40   :  { %980 = vmatprep.mubr.msk.bf16.mxu1 %vm126_vm0, %v106_v22  ;;  %1007 = vmatprep.subr.bf16.mxu1 %v1006_v25  ;;  %v109_v45 = vpack.c.bf16 %v93_v41, %v92_v40  ;;  %v100_v46 = vpack.c.bf16 %v75_v43, %v74_v42  ;;  %v336_v47 = vld [vmem:[#allocation4] sm:$0xff]  ;;  %v76_v48 = vld [vmem:[#allocation2 + $0x70] sm:$0xff]  ;;  %v77_v49 = vld [vmem:[#allocation2 + $0x78] sm:$0xff] }
  0x41   :  { %v78_v50 = vld [vmem:[#allocation2 + $0x80] sm:$0xff]  ;;  %v79_v51 = vld [vmem:[#allocation2 + $0x88] sm:$0xff]  ;;  %v101_v52 = vpack.c.bf16 %v77_v49, %v76_v48  ;;  %v338_v55 = vld [vmem:[#allocation4 + $0x10] sm:$0xff] }
  0x42   :  { %v337_v53 = vld [vmem:[#allocation4 + $0x8] sm:$0xff]  ;;  %v102_v54 = vpack.c.bf16 %v79_v51, %v78_v50  ;;  %v339_v56 = vld [vmem:[#allocation4 + $0x18] sm:$0xff]  ;;  %v80_v57 = vld [vmem:[#allocation2 + $0x90] sm:$0xff] }
  0x43   :  { %1009 = vmatpush3.bf16.msra.mxu1 %v1006_v25  ;;  %v81_v58 = vld [vmem:[#allocation2 + $0x98] sm:$0xff]  ;;  %v921_v20 = vld [vmem:[%s1517_s4] ss:$0 sm:$0xff] }
  0x44   :  { %v103_v59 = vpack.c.bf16 %v81_v58, %v80_v57 }
  0x46   :  { %961 = vmatmul.mubr.msk.bf16.gmra.mrb[4].mxu0 %vm126_vm0, %v97_v34  ;;  %981 = vmatmul.mubr.msk.bf16.gmra.mrb[4].mxu1 %vm126_vm0, %v107_v35 }
  0x47   :  { %964 = vmatprep.mubr.msk.bf16.mxu0 %vm126_vm0, %v98_v36  ;;  %984 = vmatprep.mubr.msk.bf16.mxu1 %vm126_vm0, %v108_v37 }
  0x4e   :  { %965 = vmatmul.mubr.msk.bf16.gmra.mrb[8].mxu0 %vm126_vm0, %v99_v44  ;;  %985 = vmatmul.mubr.msk.bf16.gmra.mrb[8].mxu1 %vm126_vm0, %v109_v45 }
  0x4f   :  { %968 = vmatprep.mubr.msk.bf16.mxu0 %vm126_vm0, %v100_v46  ;;  %996 = vmatprep.mubr.msk.f32.mxu1 %vm126_vm0, %v336_v47 }
  0x56   :  { %969 = vmatmul.mubr.msk.bf16.gmra.mrb[12].mxu0 %vm126_vm0, %v101_v52  ;;  %997 = vmatmul.mubr.msk.f32.vlgmr.msra.gmra.mrb[12].mxu1 %vm126_vm0, %v337_v53 }
  0x57   :  { %999 = vmatprep.mubr.msk.f32.mxu1 %vm126_vm0, %v338_v55  ;;  %972 = vmatprep.mubr.msk.bf16.mxu0 %vm126_vm0, %v102_v54 }
  0x5a   :  { %1000 = vmatmul.mubr.msk.f32.gmra.mrb[14].mxu1 %vm126_vm0, %v339_v56 }
  0x5e   :  { %973 = vmatmul.mubr.msk.bf16.gmra.mrb[16].mxu0 %vm126_vm0, %v103_v59 }
 0x111   :  { %v1285_v60 = vpop.f32.mrb[0].mxu1  ;;  %v958_v61 = vpop.f32.mrb[0].mxu0 }
 0x112   :  { %v289_v62 = vpop.f32.mrb[1].mxu1  ;;  %v209_v63 = vpop.f32.mrb[1].mxu0 }
 0x113   :  { %v979_v0 = vpop.f32.mrb[2].mxu1  ;;  %v959_v1 = vpop.f32.mrb[2].mxu0 }
 0x114   :  { %v292_v2 = vpop.f32.mrb[3].mxu1  ;;  %v212_v3 = vpop.f32.mrb[3].mxu0 }
 0x119   :  { %v1287_v4 = vpop.f32.mrb[4].mxu1  ;;  %v1289_v5 = vpop.f32.mrb[4].mxu0 }
 0x11a   :  { %v305_v6 = vpop.f32.mrb[5].mxu1  ;;  %v225_v7 = vpop.f32.mrb[5].mxu0 }
 0x11b   :  { %v983_v8 = vpop.f32.mrb[6].mxu1  ;;  %v963_v9 = vpop.f32.mrb[6].mxu0 }
 0x11c   :  { %v308_v10 = vpop.f32.mrb[7].mxu1  ;;  %v228_v11 = vpop.f32.mrb[7].mxu0 }
 0x121   :  { %v986_v12 = vpop.f32.mrb[8].mxu1  ;;  %v966_v13 = vpop.f32.mrb[8].mxu0 }
 0x122   :  { %v321_v14 = vpop.f32.mrb[9].mxu1  ;;  %v241_v15 = vpop.f32.mrb[9].mxu0 }
 0x123   :  { %v987_v16 = vpop.f32.mrb[10].mxu1  ;;  %v967_v17 = vpop.f32.mrb[10].mxu0 }
 0x124   :  { %v324_v18 = vpop.f32.mrb[11].mxu1  ;;  %v244_v19 = vpop.f32.mrb[11].mxu0 }
 0x129   :  { %v970_v21 = vpop.f32.mrb[12].mxu0  ;;  %v998_v22 = vpop.f32.mrb[12].mxu1 }
 0x12a   :  { %v435_v23 = vadd.f32 %v998_v22, %v921_v20  ;;  %v257_v24 = vpop.f32.mrb[13].mxu0  ;;  %v429_v25 = vpop.f32.mrb[13].mxu1 }
 0x12b   :  { %v430_v26 = vadd.f32 %v921_v20, %v429_v25  ;;  %v971_v27 = vpop.f32.mrb[14].mxu0 }
 0x12c   :  { %v260_v28 = vpop.f32.mrb[15].mxu0  ;;  %v449_v29 = vadd.f32 %v435_v23, %v212_v3  ;;  %v453_v30 = vadd.f32 %v435_v23, %v228_v11  ;;  %v469_v31 = vadd.f32 %v435_v23, %v292_v2  ;;  %v457_v32 = vadd.f32 %v435_v23, %v244_v19 }
 0x12d   :  { %v1294_v33 = vadd.f32 %v435_v23, %v260_v28  ;;  %v1001_v34 = vpop.f32.mrb[14].mxu1  ;;  %v473_v35 = vadd.f32 %v435_v23, %v308_v10  ;;  %v452_v36 = vadd.f32 %v430_v26, %v225_v7  ;;  %v477_v37 = vadd.f32 %v435_v23, %v324_v18 }
 0x12e   :  { %v445_v38 = vadd.f32 %v1001_v34, %v921_v20  ;;  %v439_v39 = vpop.f32.mrb[15].mxu1  ;;  %1022 = vtanh.f32 %v449_v29  ;;  %v460_v40 = vadd.f32 %v430_v26, %v257_v24  ;;  %v448_v41 = vadd.f32 %v430_v26, %v209_v63 }
 0x12f   :  { %v440_v42 = vadd.f32 %v921_v20, %v439_v39  ;;  %v468_v43 = vadd.f32 %v430_v26, %v289_v62  ;;  %v456_v44 = vadd.f32 %v430_v26, %v241_v15  ;;  %1024 = vtanh.f32 %v453_v30 }
 0x130   :  { %v472_v45 = vadd.f32 %v430_v26, %v305_v6  ;;  %v476_v46 = vadd.f32 %v430_v26, %v321_v14  ;;  %v1296_v47 = vadd.f32 %v963_v9, %v445_v38  ;;  %1026 = vtanh.f32 %v469_v31 }
 0x131   :  { %v974_v48 = vpop.f32.mrb[16].mxu0  ;;  %v451_v49 = vadd.f32 %v959_v1, %v445_v38  ;;  %v1298_v50 = vadd.f32 %v967_v17, %v445_v38  ;;  %v1300_v51 = vadd.f32 %v958_v61, %v440_v42  ;;  %1028 = vtanh.f32 %v457_v32 }
 0x132   :  { %v1302_v52 = vadd.f32 %v974_v48, %v440_v42  ;;  %v273_v53 = vpop.f32.mrb[17].mxu0  ;;  %v1304_v54 = vadd.f32 %v971_v27, %v445_v38  ;;  %v1306_v55 = vadd.f32 %v966_v13, %v440_v42  ;;  %v1310_v58 = vadd.f32 %v979_v0, %v445_v38 }
 0x133   :  { %v1308_v56 = vadd.f32 %v430_v26, %v273_v53  ;;  %v975_v57 = vpop.f32.mrb[18].mxu0  ;;  %v1312_v59 = vadd.f32 %v970_v21, %v440_v42  ;;  %1030 = vtanh.f32 %v473_v35  ;;  %v1316_v61 = vadd.f32 %v983_v8, %v445_v38 }
 0x134   :  { %v1314_v62 = vadd.f32 %v975_v57, %v445_v38  ;;  %v276_v63 = vpop.f32.mrb[19].mxu0  ;;  %v1319_v1 = vadd.f32 %v1285_v60, %v440_v42  ;;  %v1324_v3 = vadd.f32 %v1289_v5, %v440_v42  ;;  %v1327_v6 = vadd.f32 %v1287_v4, %v440_v42 }
 0x135   :  { %v1321_v2 = vadd.f32 %v435_v23, %v276_v63  ;;  %v1329_v0 = vadd.f32 %v987_v16, %v445_v38  ;;  %v1331_v7 = vadd.f32 %v986_v12, %v440_v42  ;;  %1032 = vtanh.f32 %v452_v36 }
 0x136   :  { %1034 = vtanh.f32 %v477_v37 }
 0x137   :  { %1036 = vtanh.f32 %v460_v40 }
 0x138   :  { %v1023_v9 = vpop.eup %1022  ;;  %1038 = vtanh.f32 %v448_v41 }
 0x139   :  { %v516_v8 = vsel %vm512_vm1, %v1023_v9, 0.0  ;;  %v1025_v60 = vpop.eup %1024  ;;  %1040 = vtanh.f32 %v468_v43 }
 0x13a   :  { %517 = vadd.xlane.f32.xlu0 %v516_v8  ;;  %v1027_v10 = vpop.eup %1026  ;;  %v528_v5 = vsel %vm512_vm1, %v1025_v60, 0.0  ;;  %1042 = vtanh.f32 %v456_v44 }
 0x13b   :  { %v1029_v11 = vpop.eup %1028  ;;  %529 = vadd.xlane.f32.xlu1 %v528_v5  ;;  %v576_v4 = vsel %vm512_vm1, %v1027_v10, 0.0  ;;  %1044 = vtanh.f32 %v472_v45 }
 0x13c   :  { %v540_v12 = vsel %vm512_vm1, %v1029_v11, 0.0  ;;  %1046 = vtanh.f32 %v1294_v33 }
 0x13d   :  { %v1031_v13 = vpop.eup %1030  ;;  %1048 = vtanh.f32 %v476_v46 }
 0x13e   :  { %577 = vadd.xlane.f32.xlu0 %v576_v4  ;;  %v588_v14 = vsel %vm512_vm1, %v1031_v13, 0.0  ;;  %1050 = vtanh.f32 %v451_v49 }
 0x13f   :  { %541 = vadd.xlane.f32.xlu1 %v540_v12  ;;  %v1033_v15 = vpop.eup %1032  ;;  %1052 = vtanh.f32 %v1296_v47 }
 0x140   :  { %v1035_v16 = vpop.eup %1034  ;;  %v525_v17 = vsel %vm512_vm1, %v1033_v15, 0.0  ;;  %1054 = vtanh.f32 %v1300_v51 }
 0x141   :  { %v1037_v18 = vpop.eup %1036  ;;  %v600_v19 = vsel %vm512_vm1, %v1035_v16, 0.0  ;;  %1056 = vtanh.f32 %v1298_v50 }
 0x142   :  { %589 = vadd.xlane.f32.xlu0 %v588_v14  ;;  %v1039_v20 = vpop.eup %1038  ;;  %v549_v21 = vsel %vm512_vm1, %v1037_v18, 0.0  ;;  %1058 = vtanh.f32 %v1306_v55 }
 0x143   :  { %526 = vadd.xlane.f32.xlu1 %v525_v17  ;;  %v1041_v22 = vpop.eup %1040  ;;  %v513_v23 = vsel %vm512_vm1, %v1039_v20, 0.0  ;;  %1060 = vtanh.f32 %v1304_v54 }
 0x144   :  { %v1043_v24 = vpop.eup %1042  ;;  %v573_v25 = vsel %vm512_vm1, %v1041_v22, 0.0  ;;  %1062 = vtanh.f32 %v1312_v59 }
 0x145   :  { %v1045_v26 = vpop.eup %1044  ;;  %v537_v27 = vsel %vm512_vm1, %v1043_v24, 0.0  ;;  %1064 = vtanh.f32 %v1310_v58 }
 0x146   :  { %601 = vadd.xlane.f32.xlu0 %v600_v19  ;;  %v1047_v28 = vpop.eup %1046  ;;  %v585_v29 = vsel %vm512_vm1, %v1045_v26, 0.0  ;;  %1066 = vtanh.f32 %v1319_v1 }
 0x147   :  { %550 = vadd.xlane.f32.xlu1 %v549_v21  ;;  %v1049_v30 = vpop.eup %1048  ;;  %v552_v31 = vsel %vm512_vm1, %v1047_v28, 0.0  ;;  %1068 = vtanh.f32 %v1316_v61  ;;  %v641_v21 = vlaneseq }
 0x148   :  { %v1051_v32 = vpop.eup %1050  ;;  %v597_v33 = vsel %vm512_vm1, %v1049_v30, 0.0  ;;  %1070 = vtanh.f32 %v1327_v6 }
 0x149   :  { %v1053_v34 = vpop.eup %1052  ;;  %v522_v35 = vsel %vm512_vm1, %v1051_v32, 0.0  ;;  %1072 = vtanh.f32 %v1324_v3  ;;  %v642_v24 = vand.u32 127, %v641_v21  ;;  %v644_v28 = vshrl.u32 %v641_v21, 7 }
 0x14a   :  { %514 = vadd.xlane.f32.xlu0 %v513_v23  ;;  %v1055_v36 = vpop.eup %1054  ;;  %v534_v37 = vsel %vm512_vm1, %v1053_v34, 0.0  ;;  %1074 = vtanh.f32 %v1302_v52 }
 0x14b   :  { %574 = vadd.xlane.f32.xlu1 %v573_v25  ;;  %v1057_v38 = vpop.eup %1056  ;;  %v519_v39 = vsel %vm512_vm1, %v1055_v36, 0.0  ;;  %1076 = vtanh.f32 %v1308_v56  ;;  %v1405_v32 = vsub.s32 %v642_v24, %v644_v28 }
 0x14c   :  { %v1059_v40 = vpop.eup %1058  ;;  %v546_v41 = vsel %vm512_vm1, %v1057_v38, 0.0  ;;  %1078 = vtanh.f32 %v1321_v2 }
 0x14d   :  { %v1061_v42 = vpop.eup %1060  ;;  %v543_v43 = vsel %vm512_vm1, %v1059_v40, 0.0  ;;  %1080 = vtanh.f32 %v1314_v62 }
 0x14e   :  { %538 = vadd.xlane.f32.xlu0 %v537_v27  ;;  %v1063_v44 = vpop.eup %1062  ;;  %v558_v45 = vsel %vm512_vm1, %v1061_v42, 0.0  ;;  %1082 = vtanh.f32 %v1331_v7  ;;  %v654_v27 = vadd.s32 4294967280, %v642_v24 }
 0x14f   :  { %586 = vadd.xlane.f32.xlu1 %v585_v29  ;;  %v1065_v46 = vpop.eup %1064  ;;  %v555_v47 = vsel %vm512_vm1, %v1063_v44, 0.0  ;;  %1084 = vtanh.f32 %v1329_v0  ;;  %v647_v29 = vadd.s32 4294967288, %v642_v24 }
 0x150   :  { %v1067_v48 = vpop.eup %1066  ;;  %v582_v49 = vsel %vm512_vm1, %v1065_v46, 0.0 }
 0x151   :  { %v1069_v50 = vpop.eup %1068  ;;  %v579_v51 = vsel %vm512_vm1, %v1067_v48, 0.0  ;;  %v1409_v34 = vsub.s32 %v647_v29, %v644_v28 }
 0x152   :  { %553 = vadd.xlane.f32.xlu0 %v552_v31  ;;  %v1071_v53 = vpop.eup %1070  ;;  %v594_v52 = vsel %vm512_vm1, %v1069_v50, 0.0 }
 0x153   :  { %598 = vadd.xlane.f32.xlu1 %v597_v33  ;;  %v1073_v54 = vpop.eup %1072  ;;  %v591_v55 = vsel %vm512_vm1, %v1071_v53, 0.0  ;;  %v1407_v33 = vsub.s32 %v654_v27, %v644_v28 }
 0x154   :  { %v1075_v56 = vpop.eup %1074  ;;  %v531_v57 = vsel %vm512_vm1, %v1073_v54, 0.0 }
 0x155   :  { %v1077_v58 = vpop.eup %1076  ;;  %v567_v59 = vsel %vm512_vm1, %v1075_v56, 0.0 }
 0x156   :  { %523 = vadd.xlane.f32.xlu0 %v522_v35  ;;  %v1079_v62 = vpop.eup %1078  ;;  %v561_v63 = vsel %vm512_vm1, %v1077_v58, 0.0  ;;  %v661_v35 = vadd.s32 4294967272, %v642_v24 }
 0x157   :  { %535 = vadd.xlane.f32.xlu1 %v534_v37  ;;  %v1081_v61 = vpop.eup %1080  ;;  %v564_v1 = vsel %vm512_vm1, %v1079_v62, 0.0 }
 0x158   :  { %v1083_v2 = vpop.eup %1082  ;;  %v570_v3 = vsel %vm512_vm1, %v1081_v61, 0.0  ;;  %v1417_v42 = vsub.s32 %v661_v35, %v644_v28 }
 0x159   :  { %v1085_v6 = vpop.eup %1084  ;;  %v603_v0 = vsel %vm512_vm1, %v1083_v2, 0.0 }
 0x15a   :  { %520 = vadd.xlane.f32.xlu0 %v519_v39  ;;  %v606_v7 = vsel %vm512_vm1, %v1085_v6, 0.0 }
 0x15b   :  { %547 = vadd.xlane.f32.xlu1 %v546_v41 }
 0x15e   :  { %544 = vadd.xlane.f32.xlu0 %v543_v43 }
 0x15f   :  { %559 = vadd.xlane.f32.xlu1 %v558_v45 }
 0x162   :  { %556 = vadd.xlane.f32.xlu0 %v555_v47 }
 0x163   :  { %583 = vadd.xlane.f32.xlu1 %v582_v49 }
 0x166   :  { %580 = vadd.xlane.f32.xlu0 %v579_v51 }
 0x167   :  { %595 = vadd.xlane.f32.xlu1 %v594_v52 }
 0x16a   :  { %592 = vadd.xlane.f32.xlu0 %v591_v55 }
 0x16b   :  { %532 = vadd.xlane.f32.xlu1 %v531_v57 }
 0x16e   :  { %568 = vadd.xlane.f32.xlu0 %v567_v59 }
 0x16f   :  { %562 = vadd.xlane.f32.xlu1 %v561_v63 }
 0x172   :  { %565 = vadd.xlane.f32.xlu0 %v564_v1 }
 0x173   :  { %571 = vadd.xlane.f32.xlu1 %v570_v3 }
 0x176   :  { %604 = vadd.xlane.f32.xlu0 %v603_v0 }
 0x177   :  { %607 = vadd.xlane.f32.xlu1 %v606_v7 }
 0x1c7   :  { %v518_v9 = vpop.xlane.xlu0 %517 }
 0x1c8   :  { %v530_v8 = vpop.xlane.xlu1 %529  ;;  %v651_v41 = vrot.slane %v518_v9, %v1409_v34 }
 0x1c9   :  { %v675_v44 = vrot.slane %v530_v8, %v1409_v34 }
 0x1cb   :  { %v1383_v60 = vpop.xlane.xlu0 %577 }
 0x1cc   :  { %v542_v10 = vpop.xlane.xlu1 %541  ;;  %v751_v46 = vrot.slane %v1383_v60, %v1409_v34 }
 0x1cd   :  { %v694_v50 = vrot.slane %v542_v10, %v1409_v34 }
 0x1cf   :  { %v1385_v5 = vpop.xlane.xlu0 %589 }
 0x1d0   :  { %v527_v11 = vpop.xlane.xlu1 %526  ;;  %v770_v59 = vrot.slane %v1385_v5, %v1409_v34 }
 0x1d1   :  { %v671_v39 = vrot.slane %v527_v11, %v1405_v32 }
 0x1d3   :  { %v1387_v4 = vpop.xlane.xlu0 %601  ;;  %v676_v51 = vsel %vm652_vm2, %v675_v44, %v671_v39 }
 0x1d4   :  { %v1389_v13 = vpop.xlane.xlu1 %550  ;;  %v789_v10 = vrot.slane %v1387_v4, %v1409_v34 }
 0x1d5   :  { %v709_v1 = vrot.slane %v1389_v13, %v1405_v32 }
 0x1d7   :  { %v515_v12 = vpop.xlane.xlu0 %514 }
 0x1d8   :  { %v1391_v14 = vpop.xlane.xlu1 %574  ;;  %v646_v37 = vrot.slane %v515_v12, %v1405_v32 }
 0x1d9   :  { %v747_v54 = vrot.slane %v1391_v14, %v1405_v32 }
 0x1da   :  { %v653_v47 = vsel %vm652_vm2, %v651_v41, %v646_v37 }
 0x1db   :  { %v539_v15 = vpop.xlane.xlu0 %538  ;;  %v752_v5 = vsel %vm652_vm2, %v751_v46, %v747_v54 }
 0x1dc   :  { %v1393_v16 = vpop.xlane.xlu1 %586  ;;  %v690_v45 = vrot.slane %v539_v15, %v1405_v32 }
 0x1dd   :  { %v766_v7 = vrot.slane %v1393_v16, %v1405_v32 }
 0x1de   :  { %v695_v62 = vsel %vm652_vm2, %v694_v50, %v690_v45 }
 0x1df   :  { %v1395_v17 = vpop.xlane.xlu0 %553 }
 0x1e0   :  { %v1397_v18 = vpop.xlane.xlu1 %598  ;;  %v713_v55 = vrot.slane %v1395_v17, %v1409_v34 }
 0x1e2   :  { %v714_v11 = vsel %vm652_vm2, %v713_v55, %v709_v1 }
 0x1e3   :  { %v524_v19 = vpop.xlane.xlu0 %523 }
 0x1e4   :  { %v536_v20 = vpop.xlane.xlu1 %535  ;;  %v665_v57 = vrot.slane %v524_v19, %v1417_v42  ;;  %v785_v19 = vrot.slane %v1397_v18, %v1405_v32 }
 0x1e5   :  { %v685_v56 = vrot.slane %v536_v20, %v1417_v42 }
 0x1e6   :  { %v790_v37 = vsel %vm652_vm2, %v789_v10, %v785_v19 }
 0x1e7   :  { %v521_v22 = vpop.xlane.xlu0 %520 }
 0x1e8   :  { %v1399_v23 = vpop.xlane.xlu1 %547  ;;  %v658_v40 = vrot.slane %v521_v22, %v1407_v33 }
 0x1e9   :  { %v704_v9 = vrot.slane %v1399_v23, %v1417_v42  ;;  %v771_v23 = vsel %vm652_vm2, %v770_v59, %v766_v7 }
 0x1ea   :  { %v660_v53 = vsel %vm659_vm3, %v658_v40, %v653_v47 }
 0x1eb   :  { %v545_v25 = vpop.xlane.xlu0 %544  ;;  %v667_v2 = vsel %vm666_vm4, %v665_v57, %v660_v53 }
 0x1ec   :  { %v1401_v26 = vpop.xlane.xlu1 %559  ;;  %v699_v48 = vrot.slane %v545_v25, %v1407_v33 }
 0x1ed   :  { %v723_v4 = vrot.slane %v1401_v26, %v1417_v42 }
 0x1ee   :  { %v700_v3 = vsel %vm659_vm3, %v699_v48, %v695_v62 }
 0x1ef   :  { %v557_v30 = vpop.xlane.xlu0 %556  ;;  %v705_v14 = vsel %vm666_vm4, %v704_v9, %v700_v3 }
 0x1f0   :  { %v1403_v31 = vpop.xlane.xlu1 %583  ;;  %v718_v63 = vrot.slane %v557_v30, %v1407_v33 }
 0x1f1   :  { %v761_v28 = vrot.slane %v1403_v31, %v1417_v42 }
 0x1f2   :  { %v719_v15 = vsel %vm659_vm3, %v718_v63, %v714_v11 }
 0x1f3   :  { %v581_v36 = vpop.xlane.xlu0 %580  ;;  %v724_v18 = vsel %vm666_vm4, %v723_v4, %v719_v15 }
 0x1f4   :  { %v1412_v38 = vpop.xlane.xlu1 %595  ;;  %v756_v8 = vrot.slane %v581_v36, %v1407_v33 }
 0x1f6   :  { %v757_v24 = vsel %vm659_vm3, %v756_v8, %v752_v5 }
 0x1f7   :  { %v593_v43 = vpop.xlane.xlu0 %592  ;;  %v762_v31 = vsel %vm666_vm4, %v761_v28, %v757_v24 }
 0x1f8   :  { %v533_v49 = vpop.xlane.xlu1 %532  ;;  %v775_v13 = vrot.slane %v593_v43, %v1407_v33 }
 0x1f9   :  { %v680_v52 = vrot.slane %v533_v49, %v1407_v33 }
 0x1fa   :  { %v776_v26 = vsel %vm659_vm3, %v775_v13, %v771_v23 }
 0x1fb   :  { %v569_v58 = vpop.xlane.xlu0 %568  ;;  %v681_v61 = vsel %vm659_vm3, %v680_v52, %v676_v51 }
 0x1fc   :  { %v686_v6 = vsel %vm666_vm4, %v685_v56, %v681_v61  ;;  %v563_v0 = vpop.xlane.xlu1 %562  ;;  %v737_v20 = vrot.slane %v569_v58, %v1407_v33 }
 0x1fd   :  { %v802_v60 = vsel %vm801_vm5, %v686_v6, %v667_v2  ;;  %v728_v16 = vrot.slane %v563_v0, %v1405_v32  ;;  %v780_v32 = vrot.slane %v1412_v38, %v1417_v42 }
 0x1fe   :  { %v804_v22 = vsel %vm803_vm6, %v705_v14, %v802_v60 }
 0x1ff   :  { %v566_v12 = vpop.xlane.xlu0 %565  ;;  %v806_v36 = vsel %vm805_vm7, %v724_v18, %v804_v22  ;;  %v781_v43 = vsel %vm666_vm4, %v780_v32, %v776_v26 }
 0x200   :  { %v732_v17 = vrot.slane %v566_v12, %v1409_v34  ;;  %v572_v21 = vpop.xlane.xlu1 %571 }
 0x201   :  { %v742_v25 = vrot.slane %v572_v21, %v1417_v42 }
 0x202   :  { %v733_v27 = vsel %vm652_vm2, %v732_v17, %v728_v16 }
 0x203   :  { %v738_v29 = vsel %vm659_vm3, %v737_v20, %v733_v27  ;;  %v605_v30 = vpop.xlane.xlu0 %604 }
 0x204   :  { %v794_v34 = vrot.slane %v605_v30, %v1407_v33  ;;  %v743_v35 = vsel %vm666_vm4, %v742_v25, %v738_v29  ;;  %v608_v39 = vpop.xlane.xlu1 %607 }
 0x205   :  { %v808_v40 = vsel %vm807_vm8, %v743_v35, %v806_v36  ;;  %v799_v41 = vrot.slane %v608_v39, %v1417_v42 }
 0x206   :  { %v795_v38 = vsel %vm659_vm3, %v794_v34, %v790_v37  ;;  %v810_v33 = vsel %vm809_vm9, %v762_v31, %v808_v40 }
 0x207   :  { %v812_v44 = vsel %vm811_vm10, %v781_v43, %v810_v33  ;;  %v800_v45 = vsel %vm666_vm4, %v799_v41, %v795_v38 }
 0x208   :  { %v814_v46 = vsel %vm813_vm11, %v800_v45, %v812_v44 }
 0x209   :  { %816 = vxpose.xlu0.b32.start.end [1/1] (short) (narrow) %v814_v46, 32 }
 0x289   :  { %v832_v47 = vpop.trf.xlu0 }
 0x28a   :  { %v849_v48 = vsel %vm848_vm12, %v832_v47, -inf }
 0x28b   :  { %850 = vmax.xlane.f32.xlu1 %v849_v48 }
 0x28d   :  { %v833_v49 = vpop.trf.xlu0 }
 0x28e   :  { %v852_v42 = vsel %vm848_vm12, %v833_v49, -inf }
 0x28f   :  { %853 = vmax.xlane.f32.xlu1 %v852_v42 }
 0x291   :  { %v834_v50 = vpop.trf.xlu0 }
 0x292   :  { %v855_v51 = vsel %vm848_vm12, %v834_v50, -inf }
 0x293   :  { %856 = vmax.xlane.f32.xlu1 %v855_v51 }
 0x295   :  { %v835_v53 = vpop.trf.xlu0 }
 0x296   :  { %v858_v52 = vsel %vm848_vm12, %v835_v53, -inf }
 0x297   :  { %859 = vmax.xlane.f32.xlu1 %v858_v52 }
 0x318   :  { %v851_v54 = vpop.xlane.xlu1 %850 }
 0x319   :  { %v861_v55 = vsub.f32 %v832_v47, %v851_v54 }
 0x31b   :  { %v865_v56 = vmul.f32 1.442695, %v861_v55 }
 0x31c   :  { %v854_v57 = vpop.xlane.xlu1 %853 }
 0x31d   :  { %1086 = vpow2.f32 %v865_v56  ;;  %v862_v58 = vsub.f32 %v833_v49, %v854_v57 }
 0x31f   :  { %v867_v59 = vmul.f32 1.442695, %v862_v58 }
 0x320   :  { %v857_v62 = vpop.xlane.xlu1 %856 }
 0x321   :  { %1088 = vpow2.f32 %v867_v59  ;;  %v863_v63 = vsub.f32 %v834_v50, %v857_v62 }
 0x323   :  { %v869_v61 = vmul.f32 1.442695, %v863_v63 }
 0x324   :  { %v860_v1 = vpop.xlane.xlu1 %859 }
 0x325   :  { %1090 = vpow2.f32 %v869_v61  ;;  %v864_v2 = vsub.f32 %v835_v53, %v860_v1 }
 0x327   :  { %v1087_v3 = vpop.eup %1086  ;;  %v871_v6 = vmul.f32 1.442695, %v864_v2 }
 0x328   :  { %v873_v0 = vsel %vm848_vm12, %v1087_v3, 0.0 }
 0x329   :  { %1092 = vpow2.f32 %v871_v6  ;;  %874 = vadd.xlane.f32.xlu1 %v873_v0 }
 0x32b   :  { %v1089_v7 = vpop.eup %1088 }
 0x32c   :  { %v876_v9 = vsel %vm848_vm12, %v1089_v7, 0.0 }
 0x32d   :  { %877 = vadd.xlane.f32.xlu1 %v876_v9 }
 0x32f   :  { %v1091_v8 = vpop.eup %1090 }
 0x330   :  { %v879_v60 = vsel %vm848_vm12, %v1091_v8, 0.0 }
 0x331   :  { %880 = vadd.xlane.f32.xlu1 %v879_v60 }
 0x333   :  { %v1093_v10 = vpop.eup %1092 }
 0x334   :  { %v882_v5 = vsel %vm848_vm12, %v1093_v10, 0.0 }
 0x335   :  { %883 = vadd.xlane.f32.xlu1 %v882_v5 }
 0x3b6   :  { %v875_v11 = vpop.xlane.xlu1 %874 }
 0x3b7   :  { %1094 = vrcp.f32 %v875_v11 }
 0x3ba   :  { %v878_v13 = vpop.xlane.xlu1 %877 }
 0x3bb   :  { %1096 = vrcp.f32 %v878_v13 }
 0x3be   :  { %v881_v12 = vpop.xlane.xlu1 %880 }
 0x3bf   :  { %1098 = vrcp.f32 %v881_v12 }
 0x3c1   :  { %v1095_v14 = vpop.eup %1094 }
 0x3c2   :  { %v889_v15 = vmul.f32 %v1095_v14, %v1087_v3  ;;  %v884_v16 = vpop.xlane.xlu1 %883 }
 0x3c3   :  { %1100 = vrcp.f32 %v884_v16 }
 0x3c4   :  { %893 = vst.msk [vmem:[%s1518_s5] sm:$0xff] %vm848_vm12, %v889_v15 }
 0x3c5   :  { %v1097_v17 = vpop.eup %1096 }
 0x3c6   :  { %v890_v19 = vmul.f32 %v1097_v17, %v1089_v7 }
 0x3c8   :  { %894 = vst.msk [vmem:[%s1518_s5 + $0x8] sm:$0xff] %vm848_vm12, %v890_v19 }
 0x3c9   :  { %v1099_v4 = vpop.eup %1098 }
 0x3ca   :  { %v891_v20 = vmul.f32 %v1099_v4, %v1091_v8 }
 0x3cc   :  { %895 = vst.msk [vmem:[%s1518_s5 + $0x10] sm:$0xff] %vm848_vm12, %v891_v20 }
 0x3cd   :  { %v1101_v21 = vpop.eup %1100 }
 0x3ce   :  { %v892_v22 = vmul.f32 %v1101_v21, %v1093_v10 }
 0x3d0   :  { %896 = vst.msk [vmem:[%s1518_s5 + $0x18] sm:$0xff] %vm848_vm12, %v892_v22 }
 0x3d1   :  { %901 = vsyncpa [#allocation3], 1 }
 0x3d2   :  { %902 = vsyncpa [#allocation5], 1 }

</bundles_post_ra>
